<compile_context>
chip_gen: v6e
topology: v6e:2x2x1
jax: 0.10.0
libtpu: 0.0.40
codegen_flags: <defaults>
</compile_context>

<pallas_src>
import jax
import jax.numpy as jnp
from jax.experimental import pallas as pl
from jax.experimental.pallas import tpu as pltpu


def _round_up(x, m):
    return (x + m - 1) // m * m


def _round_down(x, m):
    return max(m, (x // m) * m)


def _nbytes(a):
    return int(a.size) * int(a.dtype.itemsize)


def _vmem_limit_bytes():
    """Per-TensorCore VMEM budget with headroom below the physical capacity."""
    cap = 128 << 20
    try:
        info = pltpu.get_tpu_info()
        c = getattr(info, "vmem_capacity_bytes", None)
        if c:
            cap = int(c)
        # v7x has 64 MiB of VMEM *per TensorCore*; guard against a per-chip report.
        if "7" in str(getattr(info, "chip_version", "") or ""):
            cap = min(cap, 64 << 20)
    except Exception:
        pass
    return int(min(100 << 20, (cap * 3) // 4))


def _choose_tile_rows(n, per_row_bytes, avail_bytes, requested=None):
    """Row-tile size: multiple of 16, MXU-friendly multiple of 256 when large."""
    n16 = _round_up(max(n, 1), 16)
    if requested is not None:
        return int(min(_round_up(max(requested, 16), 16), n16))
    t = max(16, int(avail_bytes) // max(int(per_row_bytes), 1))
    t = min(t, 2048, n16)
    t = _round_down(t, 256) if t >= 256 else _round_down(t, 16)
    # v7x has two TensorCores: if one tile would cover all rows and there is enough
    # work, split into two tiles so the "parallel" axis actually shares work.
    if t >= n16 and n16 >= 512:
        t = _round_up(n16 // 2, 256)
    return int(t)


def _silu(x):
    # sigmoid = 1/(1+exp(-x)): exp on the EUP; approx reciprocal stays off the VALU slot.
    return x * pl.reciprocal(1.0 + jnp.exp(-x), approx=True)


def _rmsnorm(y, wn, eps=1e-5):
    ms = jnp.mean(y * y, axis=-1, keepdims=True)
    return y * jax.lax.rsqrt(ms + eps) * wn


# --------------------------------------------------------------------------- kernels

def feedforward_kernel_fused(x_ref, w1_ref, b1_ref, wg0_ref, bg0_ref, wg1_ref,
                             bg1_ref, w2_ref, b2_ref, wn_ref, o_ref):
    """All weights resident in VMEM; activations streamed as (TILE_N, H) row tiles."""
    cdt = w1_ref.dtype                              # MXU compute dtype (bf16)
    x = x_ref[...].astype(cdt)                      # f32 -> bf16 cast fused in-kernel
    h = jnp.dot(x, w1_ref[...], preferred_element_type=jnp.float32) + b1_ref[...]
    h_lp = h.astype(cdt)
    g0 = jnp.dot(h_lp, wg0_ref[...], preferred_element_type=jnp.float32) + bg0_ref[...]
    g1 = jnp.dot(h_lp, wg1_ref[...], preferred_element_type=jnp.float32) + bg1_ref[...]
    act = _silu(g0) * g1
    y = jnp.dot(act.astype(cdt), w2_ref[...],
                preferred_element_type=jnp.float32) + b2_ref[...]
    o_ref[...] = _rmsnorm(y, wn_ref[...]).astype(o_ref.dtype)


def feedforward_kernel_mlp_tiled(x_ref, w1_ref, b1_ref, wg0_ref, bg0_ref, wg1_ref,
                                 bg1_ref, w2_ref, b2_ref, wn_ref, o_ref,
                                 h_scr, acc_scr):
    """MLP-dim (4H) tiled path: wg0/wg1/w2 blocked along the MLP dim, ff_2 partial
    sums accumulate into an f32 scratch; ff_1 runs once per row tile into h_scr."""
    cdt = w1_ref.dtype
    k = pl.program_id(1)

    @pl.when(k == 0)
    def _():
        x = x_ref[...].astype(cdt)
        h = jnp.dot(x, w1_ref[...], preferred_element_type=jnp.float32) + b1_ref[...]
        h_scr[...] = h.astype(h_scr.dtype)
        acc_scr[...] = jnp.zeros_like(acc_scr)

    h_lp = h_scr[...]
    g0 = jnp.dot(h_lp, wg0_ref[...], preferred_element_type=jnp.float32) + bg0_ref[...]
    g1 = jnp.dot(h_lp, wg1_ref[...], preferred_element_type=jnp.float32) + bg1_ref[...]
    act = _silu(g0) * g1
    acc_scr[...] += jnp.dot(act.astype(cdt), w2_ref[...],
                            preferred_element_type=jnp.float32)

    @pl.when(k == pl.num_programs(1) - 1)
    def _():
        y = acc_scr[...] + b2_ref[...]
        o_ref[...] = _rmsnorm(y, wn_ref[...]).astype(o_ref.dtype)


# --------------------------------------------------------------------------- wrapper

def feedforward(x, params, *, tile_n=None, tile_m=None, force_mlp_tiling=False):
    """x: (batch, seq, hidden). params: prepare_params(init_params(...))."""
    b, s, h = x.shape
    m = params["w1"].shape[1]                       # mlp width = mlp_ratio * hidden
    n = b * s
    x2d = x.reshape(n, h)

    w1, b1 = params["w1"], params["b1"]
    wg0, bg0 = params["wg0"], params["bg0"]
    wg1, bg1 = params["wg1"], params["bg1"]
    w2, b2 = params["w2"], params["b2"]
    wn = params["wn"]

    vmem_limit = _vmem_limit_bytes()
    weight_bytes = sum(_nbytes(a) for a in (w1, b1, wg0, bg0, wg1, bg1, w2, b2, wn))

    # Per streamed token row (fused path): f32 temporaries + bf16 copies + I/O buffers.
    per_row_fused = (2 * 4 * h        # streamed f32 x (double-buffered)
                     + 2 * 4 * h      # f32 output (double-buffered)
                     + 5 * 4 * m      # f32 h / g0 / g1 / act / y temporaries
                     + 2 * 2 * m)     # bf16 copies of h and act fed to the MXU

    n16 = _round_up(max(n, 1), 16)
    fused_fits = weight_bytes + min(256, n16) * per_row_fused <= vmem_limit
    use_tiled = force_mlp_tiling or not fused_fits

    cost = pl.CostEstimate(
        flops=int(2 * n * (h * m + 2 * m * m + m * h)),
        transcendentals=int(2 * n * m),
        bytes_accessed=int(2 * n * h * 4 + weight_bytes),
    )

    def pad_rows(t):
        n_pad = _round_up(max(n, 1), t)
        xp = x2d if n_pad == n else jnp.pad(x2d, ((0, n_pad - n), (0, 0)))
        return xp, n_pad

    if not use_tiled:
        t = _choose_tile_rows(n, per_row_fused, vmem_limit - weight_bytes, tile_n)
        xp, n_pad = pad_rows(t)

        def run(single_buf):
            pm = pl.Buffered(1) if (single_buf and hasattr(pl, "Buffered")) else None

            def const(a):  # resident weight: constant index_map (+ single VMEM buffer)
                if pm is not None:
                    return pl.BlockSpec(a.shape, lambda i: (0, 0), pipeline_mode=pm)
                return pl.BlockSpec(a.shape, lambda i: (0, 0))

            row_spec = pl.BlockSpec((t, h), lambda i: (i, 0))
            return pl.pallas_call(
                feedforward_kernel_fused,
                out_shape=jax.ShapeDtypeStruct((n_pad, h), x.dtype),
                grid=(n_pad // t,),
                in_specs=[row_spec,
                          const(w1), const(b1), const(wg0), const(bg0),
                          const(wg1), const(bg1), const(w2), const(b2), const(wn)],
                out_specs=pl.BlockSpec((t, h), lambda i: (i, 0)),
                compiler_params=pltpu.CompilerParams(
                    dimension_semantics=("parallel",),
                    vmem_limit_bytes=vmem_limit),
                cost_estimate=cost,
            )(xp, w1, b1, wg0, bg0, wg1, bg1, w2, b2, wn)
    else:
        # K-tiled path: second grid axis (last, "arbitrary") over the 4H MLP dim.
        const_bytes = sum(_nbytes(a) for a in (w1, b1, b2, wn))
        if tile_m is None:
            tm = None
            for cand in (2048, 1024, 512, 256, 128):
                if m % cand:
                    continue
                blk = 2 * 2 * (2 * m * cand + cand * h)  # wg0+wg1+w2 blocks, bf16, 2 bufs
                if const_bytes + blk <= vmem_limit // 2:
                    tm = cand
                    break
            if tm is None:
                tm = 128 if m % 128 == 0 else m
        else:
            tm = tile_m
        blk = 2 * 2 * (2 * m * tm + tm * h)
        per_row_tiled = (2 * 4 * h + 2 * 4 * h       # streamed x / out buffers
                         + 2 * m + 4 * h             # bf16 h scratch + f32 accumulator
                         + 3 * 4 * tm + 2 * tm)      # f32 g0/g1/act tiles + bf16 act
        t = _choose_tile_rows(n, per_row_tiled, vmem_limit - const_bytes - blk, tile_n)
        xp, n_pad = pad_rows(t)

        def run(single_buf):
            pm = pl.Buffered(1) if (single_buf and hasattr(pl, "Buffered")) else None

            def const(a):
                if pm is not None:
                    return pl.BlockSpec(a.shape, lambda i, k: (0, 0), pipeline_mode=pm)
                return pl.BlockSpec(a.shape, lambda i, k: (0, 0))

            return pl.pallas_call(
                feedforward_kernel_mlp_tiled,
                out_shape=jax.ShapeDtypeStruct((n_pad, h), x.dtype),
                grid=(n_pad // t, m // tm),
                in_specs=[pl.BlockSpec((t, h), lambda i, k: (i, 0)),     # x
                          const(w1), const(b1),
                          pl.BlockSpec((m, tm), lambda i, k: (0, k)),    # wg0 block
                          pl.BlockSpec((1, tm), lambda i, k: (0, k)),    # bg0 block
                          pl.BlockSpec((m, tm), lambda i, k: (0, k)),    # wg1 block
                          pl.BlockSpec((1, tm), lambda i, k: (0, k)),    # bg1 block
                          pl.BlockSpec((tm, h), lambda i, k: (k, 0)),    # w2 block
                          const(b2), const(wn)],
                out_specs=pl.BlockSpec((t, h), lambda i, k: (i, 0)),
                scratch_shapes=[pltpu.VMEM((t, m), w1.dtype),            # h (bf16)
                                pltpu.VMEM((t, h), jnp.float32)],        # ff_2 accum
                compiler_params=pltpu.CompilerParams(
                    dimension_semantics=("parallel", "arbitrary"),
                    vmem_limit_bytes=vmem_limit),
                cost_estimate=cost,
            )(xp, w1, b1, wg0, bg0, wg1, bg1, w2, b2, wn)

    try:
        out = run(single_buf=True)       # single-buffered resident weights
    except Exception:
        out = run(single_buf=False)      # fallback: default double-buffered specs
    return out[:n].reshape(b, s, h)


# --------------------------------------------------------------------------- params

def init_params(key, hidden_size, mlp_ratio=4):
    """Deterministic synthetic f32 parameters matching the PyTorch module's shapes."""
    m = hidden_size * mlp_ratio
    ks = jax.random.split(key, 6)

    def lin(kw, kb, fan_in, fan_out):
        bound = 1.0 / jnp.sqrt(jnp.float32(fan_in))
        w = jax.random.uniform(kw, (fan_in, fan_out), jnp.float32, -bound, bound)
        bvec = jax.random.uniform(kb, (1, fan_out), jnp.float32, -bound, bound)
        return w, bvec

    w1, b1 = lin(ks[0], ks[1], hidden_size, m)            # ff_1
    wg, bg = lin(ks[2], ks[3], m, 2 * m)                  # gate_proj (column split below)
    w2, b2 = lin(ks[4], ks[5], m, hidden_size)            # ff_2
    wn = jnp.ones((1, hidden_size), jnp.float32)          # RMSNorm weight (default ones)
    return {
        "w1": w1, "b1": b1,
        "wg0": wg[:, :m], "bg0": bg[:, :m],               # SiLU branch   == chunk(2)[0]
        "wg1": wg[:, m:], "bg1": bg[:, m:],               # linear branch == chunk(2)[1]
        "w2": w2, "b2": b2, "wn": wn,
    }


def prepare_params(params, compute_dtype=jnp.bfloat16):
    """Cast weights to the MXU compute dtype ONCE (not per call); biases stay f32."""
    # TODO(synk): optional fp8 (v7x) / int8 (v5e,v6e) weight quantization with
    # per-channel scales folded into the f32 epilogue.
    out = {}
    for k, v in params.items():
        out[k] = v.astype(compute_dtype if k in ("w1", "wg0", "wg1", "w2") else jnp.float32)
    return out


def feedforward_ref(x, p, compute_dtype=jnp.bfloat16):
    """Pure-JAX reference at the same (bf16 matmul, f32 accumulate) precision."""
    cd, f32 = compute_dtype, jnp.float32
    xl = x.astype(cd)
    h = jnp.dot(xl, p["w1"].astype(cd), preferred_element_type=f32) + p["b1"]
    hl = h.astype(cd)
    g0 = jnp.dot(hl, p["wg0"].astype(cd), preferred_element_type=f32) + p["bg0"]
    g1 = jnp.dot(hl, p["wg1"].astype(cd), preferred_element_type=f32) + p["bg1"]
    act = ((g0 * jax.nn.sigmoid(g0)) * g1).astype(cd)
    y = jnp.dot(act, p["w2"].astype(cd), preferred_element_type=f32) + p["b2"]
    ms = jnp.mean(y * y, axis=-1, keepdims=True)
    return (y * jax.lax.rsqrt(ms + 1e-5) * p["wn"]).astype(x.dtype)


if __name__ == "__main__":
    batch, seq, hidden = 2, 8, 32          # mlp = 128, per-branch gate width = 128
    key = jax.random.PRNGKey(0)
    kx, kp = jax.random.split(key)

    x = jax.random.normal(kx, (batch, seq, hidden), jnp.float32)
    params = prepare_params(init_params(kp, hidden, mlp_ratio=4))

    out = jax.block_until_ready(feedforward(x, params))
    ref = feedforward_ref(x, params)
    assert out.shape == (batch, seq, hidden)
    assert jnp.allclose(out, ref, atol=2e-2, rtol=2e-2), "fused path mismatch vs reference"

    # Also exercise the MLP-dim-tiled accumulation path (used automatically when the
    # resident weights no longer fit per-TensorCore VMEM) at a slightly larger hidden.
    hidden2 = 64                           # mlp = 256 -> two 128-wide MLP tiles
    kx2, kp2 = jax.random.split(jax.random.PRNGKey(1))
    x2 = jax.random.normal(kx2, (batch, seq, hidden2), jnp.float32)
    params2 = prepare_params(init_params(kp2, hidden2, mlp_ratio=4))
    out2 = jax.block_until_ready(
        feedforward(x2, params2, force_mlp_tiling=True, tile_m=128))
    ref2 = feedforward_ref(x2, params2)
    assert out2.shape == (batch, seq, hidden2)
    assert jnp.allclose(out2, ref2, atol=2e-2, rtol=2e-2), "tiled path mismatch vs reference"

    print("KERNEL_OK")
</pallas_src>

<mosaic_0001>
module attributes {stable_mosaic.version = 11 : i64} {
  func.func @feedforward_kernel_fused(%arg0: i32, %arg1: memref<16x32xf32, #tpu.memory_space<vmem>>, %arg2: memref<32x128xbf16, #tpu.memory_space<vmem>>, %arg3: memref<1x128xf32, #tpu.memory_space<vmem>>, %arg4: memref<128x128xbf16, #tpu.memory_space<vmem>>, %arg5: memref<1x128xf32, #tpu.memory_space<vmem>>, %arg6: memref<128x128xbf16, #tpu.memory_space<vmem>>, %arg7: memref<1x128xf32, #tpu.memory_space<vmem>>, %arg8: memref<128x32xbf16, #tpu.memory_space<vmem>>, %arg9: memref<1x32xf32, #tpu.memory_space<vmem>>, %arg10: memref<1x32xf32, #tpu.memory_space<vmem>>, %arg11: memref<16x32xf32, #tpu.memory_space<vmem>>) attributes {dimension_semantics = [#tpu.dimension_semantics<parallel>], iteration_bounds = array<i64: 1>, scalar_prefetch = 0 : i64, scratch_operands = 0 : i64, tpu.core_type = #tpu.core_type<tc>, window_params = [{transform_indices = @transform_0, window_bounds = array<i64: 16, 32>}, {pipeline_mode = #tpu.pipeline_mode<synchronous>, transform_indices = @transform_1, window_bounds = array<i64: 32, 128>}, {pipeline_mode = #tpu.pipeline_mode<synchronous>, transform_indices = @transform_2, window_bounds = array<i64: 1, 128>}, {pipeline_mode = #tpu.pipeline_mode<synchronous>, transform_indices = @transform_3, window_bounds = array<i64: 128, 128>}, {pipeline_mode = #tpu.pipeline_mode<synchronous>, transform_indices = @transform_4, window_bounds = array<i64: 1, 128>}, {pipeline_mode = #tpu.pipeline_mode<synchronous>, transform_indices = @transform_5, window_bounds = array<i64: 128, 128>}, {pipeline_mode = #tpu.pipeline_mode<synchronous>, transform_indices = @transform_6, window_bounds = array<i64: 1, 128>}, {pipeline_mode = #tpu.pipeline_mode<synchronous>, transform_indices = @transform_7, window_bounds = array<i64: 128, 32>}, {pipeline_mode = #tpu.pipeline_mode<synchronous>, transform_indices = @transform_8, window_bounds = array<i64: 1, 32>}, {pipeline_mode = #tpu.pipeline_mode<synchronous>, transform_indices = @transform_9, window_bounds = array<i64: 1, 32>}, {transform_indices = @transform_10, window_bounds = array<i64: 16, 32>}]} {
    %c0 = arith.constant 0 : index
    %c0_0 = arith.constant 0 : index
    %0 = vector.load %arg1[%c0, %c0_0] : memref<16x32xf32, #tpu.memory_space<vmem>>, vector<16x32xf32>
    %1 = arith.truncf %0 : vector<16x32xf32> to vector<16x32xbf16>
    %c0_1 = arith.constant 0 : index
    %c0_2 = arith.constant 0 : index
    %2 = vector.load %arg2[%c0_1, %c0_2] : memref<32x128xbf16, #tpu.memory_space<vmem>>, vector<32x128xbf16>
    %cst = arith.constant dense<0.000000e+00> : vector<16x128xf32>
    %3 = tpu.matmul %1, %2, %cst {dimension_numbers = #tpu.dot_dimension_numbers<[1], [0], [0], [1], [0, 0, 1, 1], [], []>} : vector<16x32xbf16>, vector<32x128xbf16>, vector<16x128xf32> -> vector<16x128xf32>
    %c0_3 = arith.constant 0 : index
    %c0_4 = arith.constant 0 : index
    %4 = vector.load %arg3[%c0_3, %c0_4] : memref<1x128xf32, #tpu.memory_space<vmem>>, vector<1x128xf32>
    %5 = vector.broadcast %4 : vector<1x128xf32> to vector<16x128xf32>
    %6 = arith.addf %3, %5 : vector<16x128xf32>
    %7 = arith.truncf %6 : vector<16x128xf32> to vector<16x128xbf16>
    %c0_5 = arith.constant 0 : index
    %c0_6 = arith.constant 0 : index
    %8 = vector.load %arg4[%c0_5, %c0_6] : memref<128x128xbf16, #tpu.memory_space<vmem>>, vector<128x128xbf16>
    %cst_7 = arith.constant dense<0.000000e+00> : vector<16x128xf32>
    %9 = tpu.matmul %7, %8, %cst_7 {dimension_numbers = #tpu.dot_dimension_numbers<[1], [0], [0], [1], [0, 0, 1, 1], [], []>} : vector<16x128xbf16>, vector<128x128xbf16>, vector<16x128xf32> -> vector<16x128xf32>
    %c0_8 = arith.constant 0 : index
    %c0_9 = arith.constant 0 : index
    %10 = vector.load %arg5[%c0_8, %c0_9] : memref<1x128xf32, #tpu.memory_space<vmem>>, vector<1x128xf32>
    %11 = vector.broadcast %10 : vector<1x128xf32> to vector<16x128xf32>
    %12 = arith.addf %9, %11 : vector<16x128xf32>
    %c0_10 = arith.constant 0 : index
    %c0_11 = arith.constant 0 : index
    %13 = vector.load %arg6[%c0_10, %c0_11] : memref<128x128xbf16, #tpu.memory_space<vmem>>, vector<128x128xbf16>
    %cst_12 = arith.constant dense<0.000000e+00> : vector<16x128xf32>
    %14 = tpu.matmul %7, %13, %cst_12 {dimension_numbers = #tpu.dot_dimension_numbers<[1], [0], [0], [1], [0, 0, 1, 1], [], []>} : vector<16x128xbf16>, vector<128x128xbf16>, vector<16x128xf32> -> vector<16x128xf32>
    %c0_13 = arith.constant 0 : index
    %c0_14 = arith.constant 0 : index
    %15 = vector.load %arg7[%c0_13, %c0_14] : memref<1x128xf32, #tpu.memory_space<vmem>>, vector<1x128xf32>
    %16 = vector.broadcast %15 : vector<1x128xf32> to vector<16x128xf32>
    %17 = arith.addf %14, %16 : vector<16x128xf32>
    %cst_15 = arith.constant 0.000000e+00 : f32
    %18 = vector.broadcast %cst_15 : f32 to vector<16x128xf32>
    %19 = arith.subf %18, %12 : vector<16x128xf32>
    %20 = math.exp %19 : vector<16x128xf32>
    %cst_16 = arith.constant 1.000000e+00 : f32
    %21 = vector.broadcast %cst_16 : f32 to vector<16x128xf32>
    %22 = arith.addf %21, %20 : vector<16x128xf32>
    %23 = tpu.reciprocal %22 {approx = true} : vector<16x128xf32> -> vector<16x128xf32>
    %24 = arith.mulf %12, %23 : vector<16x128xf32>
    %25 = arith.mulf %24, %17 : vector<16x128xf32>
    %26 = arith.truncf %25 : vector<16x128xf32> to vector<16x128xbf16>
    %c0_17 = arith.constant 0 : index
    %c0_18 = arith.constant 0 : index
    %27 = vector.load %arg8[%c0_17, %c0_18] : memref<128x32xbf16, #tpu.memory_space<vmem>>, vector<128x32xbf16>
    %cst_19 = arith.constant dense<0.000000e+00> : vector<16x32xf32>
    %28 = tpu.matmul %26, %27, %cst_19 {dimension_numbers = #tpu.dot_dimension_numbers<[1], [0], [0], [1], [0, 0, 1, 1], [], []>} : vector<16x128xbf16>, vector<128x32xbf16>, vector<16x32xf32> -> vector<16x32xf32>
    %c0_20 = arith.constant 0 : index
    %c0_21 = arith.constant 0 : index
    %29 = vector.load %arg9[%c0_20, %c0_21] : memref<1x32xf32, #tpu.memory_space<vmem>>, vector<1x32xf32>
    %30 = vector.broadcast %29 : vector<1x32xf32> to vector<16x32xf32>
    %31 = arith.addf %28, %30 : vector<16x32xf32>
    %c0_22 = arith.constant 0 : index
    %c0_23 = arith.constant 0 : index
    %32 = vector.load %arg10[%c0_22, %c0_23] : memref<1x32xf32, #tpu.memory_space<vmem>>, vector<1x32xf32>
    %33 = arith.mulf %31, %31 : vector<16x32xf32>
    %cst_24 = arith.constant dense<0.000000e+00> : vector<16xf32>
    %34 = vector.multi_reduction <add>, %33, %cst_24 [1] : vector<16x32xf32> to vector<16xf32>
    %35 = vector.shape_cast %34 : vector<16xf32> to vector<16x1xf32>
    %cst_25 = arith.constant 3.200000e+01 : f32
    %36 = vector.broadcast %cst_25 : f32 to vector<16x1xf32>
    %37 = arith.divf %35, %36 : vector<16x1xf32>
    %cst_26 = arith.constant 9.99999974E-6 : f32
    %38 = vector.broadcast %cst_26 : f32 to vector<16x1xf32>
    %39 = arith.addf %37, %38 : vector<16x1xf32>
    %40 = math.rsqrt %39 : vector<16x1xf32>
    %41 = vector.broadcast %40 : vector<16x1xf32> to vector<16x32xf32>
    %42 = arith.mulf %31, %41 : vector<16x32xf32>
    %43 = vector.broadcast %32 : vector<1x32xf32> to vector<16x32xf32>
    %44 = arith.mulf %42, %43 : vector<16x32xf32>
    %c0_27 = arith.constant 0 : index
    %c0_28 = arith.constant 0 : index
    %45 = vector.load %arg11[%c0_27, %c0_28] : memref<16x32xf32, #tpu.memory_space<vmem>>, vector<16x32xf32>
    tpu.vector_store %arg11[%c0_27, %c0_28], %44 {strides = array<i32>} : memref<16x32xf32, #tpu.memory_space<vmem>>, vector<16x32xf32>,
    return
  }
  func.func @transform_0(%arg0: i32) -> (i32, i32) {
    %c0_i32 = arith.constant 0 : i32
    %c0_i32_0 = arith.constant 0 : i32
    return %arg0, %c0_i32 : i32, i32
  }
  func.func @transform_1(%arg0: i32) -> (i32, i32) {
    %c0_i32 = arith.constant 0 : i32
    %c0_i32_0 = arith.constant 0 : i32
    %c0_i32_1 = arith.constant 0 : i32
    return %c0_i32, %c0_i32_0 : i32, i32
  }
  func.func @transform_2(%arg0: i32) -> (i32, i32) {
    %c0_i32 = arith.constant 0 : i32
    %c0_i32_0 = arith.constant 0 : i32
    %c0_i32_1 = arith.constant 0 : i32
    return %c0_i32, %c0_i32_0 : i32, i32
  }
  func.func @transform_3(%arg0: i32) -> (i32, i32) {
    %c0_i32 = arith.constant 0 : i32
    %c0_i32_0 = arith.constant 0 : i32
    %c0_i32_1 = arith.constant 0 : i32
    return %c0_i32, %c0_i32_0 : i32, i32
  }
  func.func @transform_4(%arg0: i32) -> (i32, i32) {
    %c0_i32 = arith.constant 0 : i32
    %c0_i32_0 = arith.constant 0 : i32
    %c0_i32_1 = arith.constant 0 : i32
    return %c0_i32, %c0_i32_0 : i32, i32
  }
  func.func @transform_5(%arg0: i32) -> (i32, i32) {
    %c0_i32 = arith.constant 0 : i32
    %c0_i32_0 = arith.constant 0 : i32
    %c0_i32_1 = arith.constant 0 : i32
    return %c0_i32, %c0_i32_0 : i32, i32
  }
  func.func @transform_6(%arg0: i32) -> (i32, i32) {
    %c0_i32 = arith.constant 0 : i32
    %c0_i32_0 = arith.constant 0 : i32
    %c0_i32_1 = arith.constant 0 : i32
    return %c0_i32, %c0_i32_0 : i32, i32
  }
  func.func @transform_7(%arg0: i32) -> (i32, i32) {
    %c0_i32 = arith.constant 0 : i32
    %c0_i32_0 = arith.constant 0 : i32
    %c0_i32_1 = arith.constant 0 : i32
    return %c0_i32, %c0_i32_0 : i32, i32
  }
  func.func @transform_8(%arg0: i32) -> (i32, i32) {
    %c0_i32 = arith.constant 0 : i32
    %c0_i32_0 = arith.constant 0 : i32
    %c0_i32_1 = arith.constant 0 : i32
    return %c0_i32, %c0_i32_0 : i32, i32
  }
  func.func @transform_9(%arg0: i32) -> (i32, i32) {
    %c0_i32 = arith.constant 0 : i32
    %c0_i32_0 = arith.constant 0 : i32
    %c0_i32_1 = arith.constant 0 : i32
    return %c0_i32, %c0_i32_0 : i32, i32
  }
  func.func @transform_10(%arg0: i32) -> (i32, i32) {
    %c0_i32 = arith.constant 0 : i32
    %c0_i32_0 = arith.constant 0 : i32
    return %arg0, %c0_i32 : i32, i32
  }
}

module attributes {stable_mosaic.version = 11 : i64} {
  func.func @feedforward_kernel_fused(%arg0: i32, %arg1: memref<16x32xf32, #tpu.memory_space<vmem>>, %arg2: memref<32x128xbf16, #tpu.memory_space<vmem>>, %arg3: memref<1x128xf32, #tpu.memory_space<vmem>>, %arg4: memref<128x128xbf16, #tpu.memory_space<vmem>>, %arg5: memref<1x128xf32, #tpu.memory_space<vmem>>, %arg6: memref<128x128xbf16, #tpu.memory_space<vmem>>, %arg7: memref<1x128xf32, #tpu.memory_space<vmem>>, %arg8: memref<128x32xbf16, #tpu.memory_space<vmem>>, %arg9: memref<1x32xf32, #tpu.memory_space<vmem>>, %arg10: memref<1x32xf32, #tpu.memory_space<vmem>>, %arg11: memref<16x32xf32, #tpu.memory_space<vmem>>) attributes {dimension_semantics = [#tpu.dimension_semantics<parallel>], iteration_bounds = array<i64: 1>, scalar_prefetch = 0 : i64, scratch_operands = 0 : i64, tpu.core_type = #tpu.core_type<tc>, window_params = [{transform_indices = @transform_0, window_bounds = array<i64: 16, 32>}, {pipeline_mode = #tpu.pipeline_mode<synchronous>, transform_indices = @transform_1, window_bounds = array<i64: 32, 128>}, {pipeline_mode = #tpu.pipeline_mode<synchronous>, transform_indices = @transform_2, window_bounds = array<i64: 1, 128>}, {pipeline_mode = #tpu.pipeline_mode<synchronous>, transform_indices = @transform_3, window_bounds = array<i64: 128, 128>}, {pipeline_mode = #tpu.pipeline_mode<synchronous>, transform_indices = @transform_4, window_bounds = array<i64: 1, 128>}, {pipeline_mode = #tpu.pipeline_mode<synchronous>, transform_indices = @transform_5, window_bounds = array<i64: 128, 128>}, {pipeline_mode = #tpu.pipeline_mode<synchronous>, transform_indices = @transform_6, window_bounds = array<i64: 1, 128>}, {pipeline_mode = #tpu.pipeline_mode<synchronous>, transform_indices = @transform_7, window_bounds = array<i64: 128, 32>}, {pipeline_mode = #tpu.pipeline_mode<synchronous>, transform_indices = @transform_8, window_bounds = array<i64: 1, 32>}, {pipeline_mode = #tpu.pipeline_mode<synchronous>, transform_indices = @transform_9, window_bounds = array<i64: 1, 32>}, {transform_indices = @transform_10, window_bounds = array<i64: 16, 32>}]} {
    %c0 = arith.constant 0 : index
    %c0_0 = arith.constant 0 : index
    %0 = vector.load %arg1[%c0, %c0_0] : memref<16x32xf32, #tpu.memory_space<vmem>>, vector<16x32xf32>
    %1 = arith.truncf %0 : vector<16x32xf32> to vector<16x32xbf16>
    %c0_1 = arith.constant 0 : index
    %c0_2 = arith.constant 0 : index
    %2 = vector.load %arg2[%c0_1, %c0_2] : memref<32x128xbf16, #tpu.memory_space<vmem>>, vector<32x128xbf16>
    %cst = arith.constant dense<0.000000e+00> : vector<16x128xf32>
    %3 = tpu.matmul %1, %2, %cst {dimension_numbers = #tpu.dot_dimension_numbers<[1], [0], [0], [1], [0, 0, 1, 1], [], []>} : vector<16x32xbf16>, vector<32x128xbf16>, vector<16x128xf32> -> vector<16x128xf32>
    %c0_3 = arith.constant 0 : index
    %c0_4 = arith.constant 0 : index
    %4 = vector.load %arg3[%c0_3, %c0_4] : memref<1x128xf32, #tpu.memory_space<vmem>>, vector<1x128xf32>
    %5 = vector.broadcast %4 : vector<1x128xf32> to vector<16x128xf32>
    %6 = arith.addf %3, %5 : vector<16x128xf32>
    %7 = arith.truncf %6 : vector<16x128xf32> to vector<16x128xbf16>
    %c0_5 = arith.constant 0 : index
    %c0_6 = arith.constant 0 : index
    %8 = vector.load %arg4[%c0_5, %c0_6] : memref<128x128xbf16, #tpu.memory_space<vmem>>, vector<128x128xbf16>
    %cst_7 = arith.constant dense<0.000000e+00> : vector<16x128xf32>
    %9 = tpu.matmul %7, %8, %cst_7 {dimension_numbers = #tpu.dot_dimension_numbers<[1], [0], [0], [1], [0, 0, 1, 1], [], []>} : vector<16x128xbf16>, vector<128x128xbf16>, vector<16x128xf32> -> vector<16x128xf32>
    %c0_8 = arith.constant 0 : index
    %c0_9 = arith.constant 0 : index
    %10 = vector.load %arg5[%c0_8, %c0_9] : memref<1x128xf32, #tpu.memory_space<vmem>>, vector<1x128xf32>
    %11 = vector.broadcast %10 : vector<1x128xf32> to vector<16x128xf32>
    %12 = arith.addf %9, %11 : vector<16x128xf32>
    %c0_10 = arith.constant 0 : index
    %c0_11 = arith.constant 0 : index
    %13 = vector.load %arg6[%c0_10, %c0_11] : memref<128x128xbf16, #tpu.memory_space<vmem>>, vector<128x128xbf16>
    %cst_12 = arith.constant dense<0.000000e+00> : vector<16x128xf32>
    %14 = tpu.matmul %7, %13, %cst_12 {dimension_numbers = #tpu.dot_dimension_numbers<[1], [0], [0], [1], [0, 0, 1, 1], [], []>} : vector<16x128xbf16>, vector<128x128xbf16>, vector<16x128xf32> -> vector<16x128xf32>
    %c0_13 = arith.constant 0 : index
    %c0_14 = arith.constant 0 : index
    %15 = vector.load %arg7[%c0_13, %c0_14] : memref<1x128xf32, #tpu.memory_space<vmem>>, vector<1x128xf32>
    %16 = vector.broadcast %15 : vector<1x128xf32> to vector<16x128xf32>
    %17 = arith.addf %14, %16 : vector<16x128xf32>
    %cst_15 = arith.constant 0.000000e+00 : f32
    %18 = vector.broadcast %cst_15 : f32 to vector<16x128xf32>
    %19 = arith.subf %18, %12 : vector<16x128xf32>
    %20 = math.exp %19 : vector<16x128xf32>
    %cst_16 = arith.constant 1.000000e+00 : f32
    %21 = vector.broadcast %cst_16 : f32 to vector<16x128xf32>
    %22 = arith.addf %21, %20 : vector<16x128xf32>
    %23 = tpu.reciprocal %22 {approx = true} : vector<16x128xf32> -> vector<16x128xf32>
    %24 = arith.mulf %12, %23 : vector<16x128xf32>
    %25 = arith.mulf %24, %17 : vector<16x128xf32>
    %26 = arith.truncf %25 : vector<16x128xf32> to vector<16x128xbf16>
    %c0_17 = arith.constant 0 : index
    %c0_18 = arith.constant 0 : index
    %27 = vector.load %arg8[%c0_17, %c0_18] : memref<128x32xbf16, #tpu.memory_space<vmem>>, vector<128x32xbf16>
    %cst_19 = arith.constant dense<0.000000e+00> : vector<16x32xf32>
    %28 = tpu.matmul %26, %27, %cst_19 {dimension_numbers = #tpu.dot_dimension_numbers<[1], [0], [0], [1], [0, 0, 1, 1], [], []>} : vector<16x128xbf16>, vector<128x32xbf16>, vector<16x32xf32> -> vector<16x32xf32>
    %c0_20 = arith.constant 0 : index
    %c0_21 = arith.constant 0 : index
    %29 = vector.load %arg9[%c0_20, %c0_21] : memref<1x32xf32, #tpu.memory_space<vmem>>, vector<1x32xf32>
    %30 = vector.broadcast %29 : vector<1x32xf32> to vector<16x32xf32>
    %31 = arith.addf %28, %30 : vector<16x32xf32>
    %c0_22 = arith.constant 0 : index
    %c0_23 = arith.constant 0 : index
    %32 = vector.load %arg10[%c0_22, %c0_23] : memref<1x32xf32, #tpu.memory_space<vmem>>, vector<1x32xf32>
    %33 = arith.mulf %31, %31 : vector<16x32xf32>
    %cst_24 = arith.constant dense<0.000000e+00> : vector<16xf32>
    %34 = vector.multi_reduction <add>, %33, %cst_24 [1] : vector<16x32xf32> to vector<16xf32>
    %35 = vector.shape_cast %34 : vector<16xf32> to vector<16x1xf32>
    %cst_25 = arith.constant 3.200000e+01 : f32
    %36 = vector.broadcast %cst_25 : f32 to vector<16x1xf32>
    %37 = arith.divf %35, %36 : vector<16x1xf32>
    %cst_26 = arith.constant 9.99999974E-6 : f32
    %38 = vector.broadcast %cst_26 : f32 to vector<16x1xf32>
    %39 = arith.addf %37, %38 : vector<16x1xf32>
    %40 = math.rsqrt %39 : vector<16x1xf32>
    %41 = vector.broadcast %40 : vector<16x1xf32> to vector<16x32xf32>
    %42 = arith.mulf %31, %41 : vector<16x32xf32>
    %43 = vector.broadcast %32 : vector<1x32xf32> to vector<16x32xf32>
    %44 = arith.mulf %42, %43 : vector<16x32xf32>
    %c0_27 = arith.constant 0 : index
    %c0_28 = arith.constant 0 : index
    %45 = vector.load %arg11[%c0_27, %c0_28] : memref<16x32xf32, #tpu.memory_space<vmem>>, vector<16x32xf32>
    tpu.vector_store %arg11[%c0_27, %c0_28], %44 {strides = array<i32>} : memref<16x32xf32, #tpu.memory_space<vmem>>, vector<16x32xf32>,
    return
  }
  func.func @transform_0(%arg0: i32) -> (i32, i32) {
    %c0_i32 = arith.constant 0 : i32
    %c0_i32_0 = arith.constant 0 : i32
    return %arg0, %c0_i32 : i32, i32
  }
  func.func @transform_1(%arg0: i32) -> (i32, i32) {
    %c0_i32 = arith.constant 0 : i32
    %c0_i32_0 = arith.constant 0 : i32
    %c0_i32_1 = arith.constant 0 : i32
    return %c0_i32, %c0_i32_0 : i32, i32
  }
  func.func @transform_2(%arg0: i32) -> (i32, i32) {
    %c0_i32 = arith.constant 0 : i32
    %c0_i32_0 = arith.constant 0 : i32
    %c0_i32_1 = arith.constant 0 : i32
    return %c0_i32, %c0_i32_0 : i32, i32
  }
  func.func @transform_3(%arg0: i32) -> (i32, i32) {
    %c0_i32 = arith.constant 0 : i32
    %c0_i32_0 = arith.constant 0 : i32
    %c0_i32_1 = arith.constant 0 : i32
    return %c0_i32, %c0_i32_0 : i32, i32
  }
  func.func @transform_4(%arg0: i32) -> (i32, i32) {
    %c0_i32 = arith.constant 0 : i32
    %c0_i32_0 = arith.constant 0 : i32
    %c0_i32_1 = arith.constant 0 : i32
    return %c0_i32, %c0_i32_0 : i32, i32
  }
  func.func @transform_5(%arg0: i32) -> (i32, i32) {
    %c0_i32 = arith.constant 0 : i32
    %c0_i32_0 = arith.constant 0 : i32
    %c0_i32_1 = arith.constant 0 : i32
    return %c0_i32, %c0_i32_0 : i32, i32
  }
  func.func @transform_6(%arg0: i32) -> (i32, i32) {
    %c0_i32 = arith.constant 0 : i32
    %c0_i32_0 = arith.constant 0 : i32
    %c0_i32_1 = arith.constant 0 : i32
    return %c0_i32, %c0_i32_0 : i32, i32
  }
  func.func @transform_7(%arg0: i32) -> (i32, i32) {
    %c0_i32 = arith.constant 0 : i32
    %c0_i32_0 = arith.constant 0 : i32
    %c0_i32_1 = arith.constant 0 : i32
    return %c0_i32, %c0_i32_0 : i32, i32
  }
  func.func @transform_8(%arg0: i32) -> (i32, i32) {
    %c0_i32 = arith.constant 0 : i32
    %c0_i32_0 = arith.constant 0 : i32
    %c0_i32_1 = arith.constant 0 : i32
    return %c0_i32, %c0_i32_0 : i32, i32
  }
  func.func @transform_9(%arg0: i32) -> (i32, i32) {
    %c0_i32 = arith.constant 0 : i32
    %c0_i32_0 = arith.constant 0 : i32
    %c0_i32_1 = arith.constant 0 : i32
    return %c0_i32, %c0_i32_0 : i32, i32
  }
  func.func @transform_10(%arg0: i32) -> (i32, i32) {
    %c0_i32 = arith.constant 0 : i32
    %c0_i32_0 = arith.constant 0 : i32
    return %arg0, %c0_i32 : i32, i32
  }
}

</mosaic_0001>

<bundles_post_ra>
// kernel: tpu_custom_call.1
= control target key start
LH: loop header
LB: loop body
LE: loop exit
PB: predicated region body
PF: predicated region fallthrough
CT: control target
= control target key end

     0   :  { %15 = vsyncpa [#allocation3], 0  ;;  %s958_s0 = inlined_call_operand.vmem [shape: f32[16,32], index: 0, kind: input, shape index: {}]   ;;  %s959_s1 = inlined_call_operand.hbm [shape: bf16[32,128], index: 1, kind: input, shape index: {}]   ;;  %s960_s2 = inlined_call_operand.vmem [shape: f32[1,128], index: 2, kind: input, shape index: {}]   ;;  %s961_s3 = inlined_call_operand.vmem [shape: bf16[128,128], index: 3, kind: input, shape index: {}]   ;;  %s962_s4 = inlined_call_operand.vmem [shape: f32[1,128], index: 4, kind: input, shape index: {}]   ;;  %s963_s5 = inlined_call_operand.hbm [shape: bf16[128,128], index: 5, kind: input, shape index: {}]   ;;  %s964_s6 = inlined_call_operand.vmem [shape: f32[1,128], index: 6, kind: input, shape index: {}]   ;;  %s965_s7 = inlined_call_operand.vmem [shape: bf16[128,32], index: 7, kind: input, shape index: {}]   ;;  %s966_s8 = inlined_call_operand.vmem [shape: f32[1,32], index: 8, kind: input, shape index: {}]   ;;  %s967_s9 = inlined_call_operand.vmem [shape: f32[1,32], index: 9, kind: input, shape index: {}]   ;;  %s968_s10 = inlined_call_operand.hbm [shape: f32[16,32], index: 10, kind: output, shape index: {}]  }
   0x1   :  { %16 = vsyncpa [#allocation6], 0 }
   0x2   :  { %17 = vsyncpa [#allocation4], 0  ;;  %s777_s13 = smov [#allocation2]  }
   0x3   :  { %s25_s14 = sshll.u32 %s777_s13, 4  ;;  %s26_s14 = int_to_ptr.vmem [resolvable:$true] %s25_s14 }
   0x4   :  { %s719_s15 = scalar_lea.vmem %s26_s14, 256  ;;  %p724_p1 = scmp.lt.s32.totalorder %s26_s14, %s26_s14 }
   0x5   :  { %p720_p0 = scmp.ne.s32.totalorder %s26_s14, %s719_s15  ;;  %p725_p2 = scmp.lt.s32.totalorder %s719_s15, %s719_s15 }
   0x7   :  { %p726_p3 = por %p725_p2, %p724_p1 }
   0x9   :  { %p727_p4 = pnand %p726_p3, %p720_p0 }
   0xb   :  { %730 = shalt.err (!%p727_p4)
}
   0xc   :  { %s778_s16 = smov 64   ;;  %s779_s17 = smov 4  }
   0xd   :  { %31 = dma.hbm_to_vmem [thread:$0]  %s959_s1, 256, %s26_s14, [#allocation3], %s778_s16, %s778_s16, %s779_s17  }
   0xe   :  { %s780_s20 = smov [#allocation5]  }
   0xf   :  { %s43_s21 = sshll.u32 %s780_s20, 4  ;;  %s44_s21 = int_to_ptr.vmem [resolvable:$true] %s43_s21 }
  0x10   :  { %s739_s22 = scalar_lea.vmem %s44_s21, 1024  ;;  %p744_p6 = scmp.lt.s32.totalorder %s44_s21, %s44_s21 }
  0x11   :  { %p740_p5 = scmp.ne.s32.totalorder %s44_s21, %s739_s22  ;;  %p745_p7 = scmp.lt.s32.totalorder %s739_s22, %s739_s22 }
  0x13   :  { %p746_p8 = por %p745_p7, %p744_p6 }
  0x15   :  { %p747_p9 = pnand %p746_p8, %p740_p5 }
  0x17   :  { %750 = shalt.err (!%p747_p9)
}
  0x18   :  { %49 = dma.hbm_to_vmem [thread:$0]  %s963_s5, 1024, %s44_s21, [#allocation6], %s778_s16, %s778_s16, %s779_s17  }
  0x19   :  { %771 = dma.done.wait [#allocation3], 256  }
  0x1a   :  { %772 = vsyncadd [#allocation3], 4294967040 }
  0x1b   :  { %773 = dma.done.wait [#allocation6], 1024  }
  0x1c   :  { %774 = vsyncadd [#allocation6], 4294966272  ;;  %v781_v0 = vmov 0.0   ;;  %vm782_vm0 = vmmov 0   ;;  %v673_v1 = vld [vmem:[#allocation2 + $0x8] sm:$0xff]   ;;  %v674_v2 = vld [vmem:[#allocation2] sm:$0xff]  }
  0x1d   :  { %596 = vmatprep.subr.bf16.mxu0 %v781_v0  ;;  %600 = vmatprep.mubr.msk.bf16.mxu0 %vm782_vm0, %v781_v0  ;;  %v65_v3 = vld [vmem:[%s958_s0] sm:$0xff]  ;;  %v66_v4 = vld [vmem:[%s958_s0 + $0x8] sm:$0xff]  ;;  %v675_v5 = vld [vmem:[%s961_s3 + $0x38] sm:$0xff]   ;;  %vm91_vm1 = vcmask 261120   ;;  %s783_s19 = smov [#allocation7]  }
  0x1e   :  { %604 = vmatprep.subr.bf16.mxu1 %v781_v0  ;;  %620 = vmatprep.mubr.msk.bf16.mxu1 %vm782_vm0, %v781_v0  ;;  %v67_v6 = vpack.c.bf16 %v66_v4, %v65_v3  ;;  %v677_v7 = vld [vmem:[%s961_s3 + $0x30] sm:$0xff]   ;;  %v676_v8 = vld [vmem:[#allocation5 + $0x38] sm:$0xff]   ;;  %v678_v10 = vld [vmem:[#allocation5 + $0x30] sm:$0xff]   ;;  %s521_s20 = sshll.u32 %s783_s19, 4  ;;  %s522_s20 = int_to_ptr.vmem [resolvable:$true] %s521_s20 }
  0x1f   :  { %597 = vmatpush3.bf16.msra.mxu0 %v673_v1  ;;  %605 = vmatpush3.bf16.msra.mxu1 %v675_v5  ;;  %v679_v9 = vld [vmem:[%s961_s3 + $0x28] sm:$0xff]   ;;  %v681_v11 = vld [vmem:[%s961_s3 + $0x20] sm:$0xff]   ;;  %v680_v12 = vld [vmem:[#allocation5 + $0x28] sm:$0xff]   ;;  %s751_s21 = scalar_lea.vmem %s522_s20, 256  ;;  %p756_p11 = scmp.lt.s32.totalorder %s522_s20, %s522_s20 }
  0x20   :  { %598 = vmatprep.subr.bf16.mxu0 %v781_v0  ;;  %606 = vmatprep.subr.bf16.mxu1 %v781_v0  ;;  %v683_v13 = vld [vmem:[%s961_s3 + $0x18] sm:$0xff]   ;;  %v682_v14 = vld [vmem:[#allocation5 + $0x20] sm:$0xff]   ;;  %v684_v16 = vld [vmem:[#allocation5 + $0x18] sm:$0xff]   ;;  %p752_p10 = scmp.ne.s32.totalorder %s522_s20, %s751_s21  ;;  %p757_p12 = scmp.lt.s32.totalorder %s751_s21, %s751_s21 }
  0x21   :  { %v685_v15 = vld [vmem:[%s961_s3 + $0x10] sm:$0xff]   ;;  %v686_v17 = vld [vmem:[#allocation5 + $0x10] sm:$0xff]   ;;  %v687_v18 = vld [vmem:[%s961_s3 + $0x8] sm:$0xff]  }
  0x22   :  { %v688_v19 = vld [vmem:[#allocation5 + $0x8] sm:$0xff]   ;;  %v689_v20 = vld [vmem:[%s961_s3] sm:$0xff]   ;;  %v690_v21 = vld [vmem:[#allocation5] sm:$0xff]   ;;  %p758_p13 = por %p757_p12, %p756_p11 }
  0x23   :  { %599 = vmatpush3.bf16.msra.mxu0 %v674_v2  ;;  %607 = vmatpush3.bf16.msra.mxu1 %v677_v7  ;;  %v534_v23 = vld [vmem:[%s960_s2] ss:$0 sm:$0xff]  ;;  %v691_v30 = vld [vmem:[%s965_s7 + $0x38] sm:$0xff]   ;;  %v692_v31 = vld [vmem:[%s965_s7 + $0x30] sm:$0xff]  }
  0x24   :  { %624 = vmatprep.subr.bf16.mxu0 %v781_v0  ;;  %608 = vmatprep.subr.bf16.mxu1 %v781_v0  ;;  %v693_v32 = vld [vmem:[%s965_s7 + $0x28] sm:$0xff]   ;;  %v694_v33 = vld [vmem:[%s965_s7 + $0x20] sm:$0xff]   ;;  %v695_v34 = vld [vmem:[%s965_s7 + $0x18] sm:$0xff]   ;;  %p759_p0 = pnand %p758_p13, %p752_p10 }
  0x25   :  { %v696_v35 = vld [vmem:[%s965_s7 + $0x10] sm:$0xff]   ;;  %v697_v36 = vld [vmem:[%s965_s7 + $0x8] sm:$0xff]   ;;  %v698_v37 = vld [vmem:[%s965_s7] sm:$0xff]  }
  0x26   :  { %601 = vmatmul.mubr.msk.bf16.vlgmr.msra.gmra.mxu0 %vm91_vm1, %v67_v6  ;;  %v538_v38 = vld [vmem:[%s962_s4] ss:$0 sm:$0xff] }
  0x27   :  { %625 = vmatpush3.bf16.msra.mxu0 %v676_v8  ;;  %640 = vmatprep.mubr.msk.bf16.mxu0 %vm782_vm0, %v781_v0  ;;  %v547_v58 = vld [vmem:[%s964_s6] ss:$0 sm:$0xff] }
  0x28   :  { %626 = vmatprep.subr.bf16.mxu0 %v781_v0  ;;  %609 = vmatpush3.bf16.msra.mxu1 %v679_v9  ;;  %v556_v3 = vld [vmem:[%s966_s8] ss:$0 sm:$0xff] }
  0x29   :  { %610 = vmatprep.subr.bf16.mxu1 %v781_v0 }
  0x2b   :  { %627 = vmatpush3.bf16.msra.mxu0 %v678_v10 }
  0x2c   :  { %628 = vmatprep.subr.bf16.mxu0 %v781_v0  ;;  %611 = vmatpush3.bf16.msra.mxu1 %v681_v11 }
  0x2d   :  { %612 = vmatprep.subr.bf16.mxu1 %v781_v0 }
  0x2f   :  { %629 = vmatpush3.bf16.msra.mxu0 %v680_v12 }
  0x30   :  { %630 = vmatprep.subr.bf16.mxu0 %v781_v0  ;;  %613 = vmatpush3.bf16.msra.mxu1 %v683_v13 }
  0x31   :  { %614 = vmatprep.subr.bf16.mxu1 %v781_v0 }
  0x33   :  { %631 = vmatpush3.bf16.msra.mxu0 %v682_v14 }
  0x34   :  { %632 = vmatprep.subr.bf16.mxu0 %v781_v0  ;;  %615 = vmatpush3.bf16.msra.mxu1 %v685_v15 }
  0x35   :  { %616 = vmatprep.subr.bf16.mxu1 %v781_v0 }
  0x37   :  { %633 = vmatpush3.bf16.msra.mxu0 %v684_v16 }
  0x38   :  { %634 = vmatprep.subr.bf16.mxu0 %v781_v0  ;;  %617 = vmatpush3.bf16.msra.mxu1 %v687_v18 }
  0x39   :  { %618 = vmatprep.subr.bf16.mxu1 %v781_v0 }
  0x3b   :  { %635 = vmatpush3.bf16.msra.mxu0 %v686_v17 }
  0x3c   :  { %636 = vmatprep.subr.bf16.mxu0 %v781_v0  ;;  %619 = vmatpush3.bf16.msra.mxu1 %v689_v20 }
  0x3d   :  { %644 = vmatprep.subr.bf16.mxu1 %v781_v0 }
  0x3f   :  { %637 = vmatpush3.bf16.msra.mxu0 %v688_v19 }
  0x40   :  { %638 = vmatprep.subr.bf16.mxu0 %v781_v0 }
  0x43   :  { %639 = vmatpush3.bf16.msra.mxu0 %v690_v21  ;;  %v565_v21 = vld [vmem:[%s967_s9] ss:$0 sm:$0xff] }
  0xe6   :  { %v129_v22 = vpop.f32.mrf.mxu0 }
  0xe7   :  { %v130_v26 = vadd.f32 %v534_v23, %v129_v22 }
  0xe8   :  { %v602_v24 = vpop.f32.mrf.mxu0 }
  0xea   :  { %v132_v25 = vpop.f32.mrf.mxu0 }
  0xeb   :  { %v133_v27 = vadd.f32 %v534_v23, %v132_v25 }
  0xec   :  { %v603_v28 = vpop.f32.mrf.mxu0 }
  0xed   :  { %v136_v29 = vpack.c.bf16 %v133_v27, %v130_v26 }
  0xef   :  { %621 = vmatmul.mubr.bf16.vlgmr.msra.gmra.mxu1 %v136_v29  ;;  %641 = vmatmul.mubr.bf16.vlgmr.msra.gmra.mxu0 %v136_v29 }
  0xf0   :  { %660 = vmatprep.mubr.msk.bf16.mxu1 %vm782_vm0, %v781_v0  ;;  %645 = vmatpush3.bf16.msra.mxu1 %v691_v30 }
  0xf1   :  { %646 = vmatprep.subr.bf16.mxu1 %v781_v0 }
  0xf4   :  { %647 = vmatpush3.bf16.msra.mxu1 %v692_v31 }
  0xf5   :  { %648 = vmatprep.subr.bf16.mxu1 %v781_v0 }
  0xf8   :  { %649 = vmatpush3.bf16.msra.mxu1 %v693_v32 }
  0xf9   :  { %650 = vmatprep.subr.bf16.mxu1 %v781_v0 }
  0xfc   :  { %651 = vmatpush3.bf16.msra.mxu1 %v694_v33 }
  0xfd   :  { %652 = vmatprep.subr.bf16.mxu1 %v781_v0 }
 0x100   :  { %653 = vmatpush3.bf16.msra.mxu1 %v695_v34 }
 0x101   :  { %654 = vmatprep.subr.bf16.mxu1 %v781_v0 }
 0x104   :  { %655 = vmatpush3.bf16.msra.mxu1 %v696_v35 }
 0x105   :  { %656 = vmatprep.subr.bf16.mxu1 %v781_v0 }
 0x108   :  { %657 = vmatpush3.bf16.msra.mxu1 %v697_v36 }
 0x109   :  { %658 = vmatprep.subr.bf16.mxu1 %v781_v0 }
 0x10c   :  { %659 = vmatpush3.bf16.msra.mxu1 %v698_v37 }
 0x1af   :  { %v242_v39 = vpop.f32.mrf.mxu1  ;;  %v354_v40 = vpop.f32.mrf.mxu0 }
 0x1b0   :  { %v243_v41 = vadd.f32 %v538_v38, %v242_v39  ;;  %v355_v61 = vadd.f32 %v547_v58, %v354_v40 }
 0x1b1   :  { %v622_v42 = vpop.f32.mrf.mxu1  ;;  %v642_v43 = vpop.f32.mrf.mxu0 }
 0x1b2   :  { %v361_v44 = vsub.f32 0.0, %v243_v41 }
 0x1b3   :  { %v245_v45 = vpop.f32.mrf.mxu1  ;;  %v357_v46 = vpop.f32.mrf.mxu0 }
 0x1b4   :  { %v363_v47 = vmul.f32 1.442695, %v361_v44  ;;  %v246_v48 = vadd.f32 %v538_v38, %v245_v45  ;;  %v358_v63 = vadd.f32 %v547_v58, %v357_v46 }
 0x1b5   :  { %v623_v49 = vpop.f32.mrf.mxu1  ;;  %v643_v50 = vpop.f32.mrf.mxu0 }
 0x1b6   :  { %699 = vpow2.f32 %v363_v47  ;;  %v362_v51 = vsub.f32 0.0, %v246_v48 }
 0x1b8   :  { %v365_v52 = vmul.f32 1.442695, %v362_v51 }
 0x1ba   :  { %701 = vpow2.f32 %v365_v52 }
 0x1c3   :  { %v700_v53 = vpop.eup %699 }
 0x1c4   :  { %v367_v54 = vadd.f32 1.0, %v700_v53 }
 0x1c6   :  { %703 = vrcp.f32 %v367_v54 }
 0x1c7   :  { %v702_v55 = vpop.eup %701 }
 0x1c8   :  { %v368_v56 = vadd.f32 1.0, %v702_v55 }
 0x1ca   :  { %705 = vrcp.f32 %v368_v56 }
 0x1d3   :  { %v704_v57 = vpop.eup %703 }
 0x1d4   :  { %v371_v59 = vmul.f32 %v704_v57, %v243_v41 }
 0x1d6   :  { %v373_v0 = vmul.f32 %v371_v59, %v355_v61 }
 0x1d7   :  { %v706_v60 = vpop.eup %705 }
 0x1d8   :  { %v372_v62 = vmul.f32 %v706_v60, %v246_v48 }
 0x1da   :  { %v374_v1 = vmul.f32 %v372_v62, %v358_v63 }
 0x1dc   :  { %v375_v2 = vpack.c.bf16 %v374_v1, %v373_v0 }
 0x1de   :  { %661 = vmatmul.mubr.bf16.vlgmr.msra.gmra.mxu1 %v375_v2 }
 0x29e   :  { %v481_v4 = vpop.f32.mrf.mxu1 }
 0x29f   :  { %v482_v5 = vadd.f32 %v556_v3, %v481_v4 }
 0x2a0   :  { %v662_v6 = vpop.f32.mrf.mxu1 }
 0x2a1   :  { %v489_v7 = vmul.f32 %v482_v5, %v482_v5 }
 0x2a2   :  { %v484_v8 = vpop.f32.mrf.mxu1 }
 0x2a3   :  { %v485_v9 = vadd.f32 %v556_v3, %v484_v8  ;;  %v491_v10 = vsel %vm91_vm1, %v489_v7, 0.0 }
 0x2a4   :  { %492 = vadd.xlane.f32.xlu0 %v491_v10  ;;  %v663_v11 = vpop.f32.mrf.mxu1 }
 0x2a5   :  { %v490_v12 = vmul.f32 %v485_v9, %v485_v9 }
 0x2a7   :  { %v494_v13 = vsel %vm91_vm1, %v490_v12, 0.0 }
 0x2a8   :  { %495 = vadd.xlane.f32.xlu0 %v494_v13 }
 0x32d   :  { %v493_v14 = vpop.xlane.xlu0 %492 }
 0x32e   :  { %v498_v15 = vmul.f32 0.03125, %v493_v14 }
 0x330   :  { %v500_v16 = vadd.f32 1e-05, %v498_v15 }
 0x331   :  { %v496_v17 = vpop.xlane.xlu0 %495 }
 0x332   :  { %707 = vrsqrt.f32 %v500_v16  ;;  %v499_v18 = vmul.f32 0.03125, %v496_v17 }
 0x334   :  { %v501_v19 = vadd.f32 1e-05, %v499_v18 }
 0x336   :  { %709 = vrsqrt.f32 %v501_v19 }
 0x33f   :  { %v708_v20 = vpop.eup %707 }
 0x340   :  { %v504_v22 = vmul.f32 %v708_v20, %v482_v5 }
 0x342   :  { %v512_v23 = vmul.f32 %v565_v21, %v504_v22 }
 0x343   :  { %v710_v24 = vpop.eup %709 }
 0x344   :  { %v505_v25 = vmul.f32 %v710_v24, %v485_v9  ;;  %514 = vst.msk [vmem:[#allocation7] sm:$0xff] %vm91_vm1, %v512_v23 }
 0x346   :  { %v513_v26 = vmul.f32 %v565_v21, %v505_v25 }
 0x348   :  { %515 = vst.msk [vmem:[#allocation7 + $0x8] sm:$0xff] %vm91_vm1, %v513_v26 }
 0x349   :  { %762 = shalt.err (!%p759_p0)
}
 0x34a   :  { %s784_s9 = smov 128   ;;  %s785_s22 = smov 8  }
 0x34b   :  { %527 = dma.vmem_to_hbm [thread:$0]  %s522_s20, 256, %s968_s10, [#allocation4], %s784_s9, %s784_s9, %s785_s22  }
 0x34c   :  { %775 = dma.done.wait [#allocation4], 256  }
 0x34d   :  { %776 = vsyncadd [#allocation4], 4294967040 }
 0x34e   :  { %531 = vsyncpa [#allocation3], 1 }
 0x34f   :  { %532 = vsyncpa [#allocation6], 1 }
 0x350   :  { %533 = vsyncpa [#allocation4], 1 }

// kernel: tpu_custom_call.1
= control target key start
LH: loop header
LB: loop body
LE: loop exit
PB: predicated region body
PF: predicated region fallthrough
CT: control target
= control target key end

     0   :  { %15 = vsyncpa [#allocation3], 0  ;;  %s958_s0 = inlined_call_operand.vmem [shape: f32[16,32], index: 0, kind: input, shape index: {}]   ;;  %s959_s1 = inlined_call_operand.hbm [shape: bf16[32,128], index: 1, kind: input, shape index: {}]   ;;  %s960_s2 = inlined_call_operand.vmem [shape: f32[1,128], index: 2, kind: input, shape index: {}]   ;;  %s961_s3 = inlined_call_operand.vmem [shape: bf16[128,128], index: 3, kind: input, shape index: {}]   ;;  %s962_s4 = inlined_call_operand.vmem [shape: f32[1,128], index: 4, kind: input, shape index: {}]   ;;  %s963_s5 = inlined_call_operand.hbm [shape: bf16[128,128], index: 5, kind: input, shape index: {}]   ;;  %s964_s6 = inlined_call_operand.vmem [shape: f32[1,128], index: 6, kind: input, shape index: {}]   ;;  %s965_s7 = inlined_call_operand.vmem [shape: bf16[128,32], index: 7, kind: input, shape index: {}]   ;;  %s966_s8 = inlined_call_operand.vmem [shape: f32[1,32], index: 8, kind: input, shape index: {}]   ;;  %s967_s9 = inlined_call_operand.vmem [shape: f32[1,32], index: 9, kind: input, shape index: {}]   ;;  %s968_s10 = inlined_call_operand.hbm [shape: f32[16,32], index: 10, kind: output, shape index: {}]  }
   0x1   :  { %16 = vsyncpa [#allocation6], 0 }
   0x2   :  { %17 = vsyncpa [#allocation4], 0  ;;  %s777_s13 = smov [#allocation2]  }
   0x3   :  { %s25_s14 = sshll.u32 %s777_s13, 4  ;;  %s26_s14 = int_to_ptr.vmem [resolvable:$true] %s25_s14 }
   0x4   :  { %s719_s15 = scalar_lea.vmem %s26_s14, 256  ;;  %p724_p1 = scmp.lt.s32.totalorder %s26_s14, %s26_s14 }
   0x5   :  { %p720_p0 = scmp.ne.s32.totalorder %s26_s14, %s719_s15  ;;  %p725_p2 = scmp.lt.s32.totalorder %s719_s15, %s719_s15 }
   0x7   :  { %p726_p3 = por %p725_p2, %p724_p1 }
   0x9   :  { %p727_p4 = pnand %p726_p3, %p720_p0 }
   0xb   :  { %730 = shalt.err (!%p727_p4)
}
   0xc   :  { %s778_s16 = smov 64   ;;  %s779_s17 = smov 4  }
   0xd   :  { %31 = dma.hbm_to_vmem [thread:$0]  %s959_s1, 256, %s26_s14, [#allocation3], %s778_s16, %s778_s16, %s779_s17  }
   0xe   :  { %s780_s20 = smov [#allocation5]  }
   0xf   :  { %s43_s21 = sshll.u32 %s780_s20, 4  ;;  %s44_s21 = int_to_ptr.vmem [resolvable:$true] %s43_s21 }
  0x10   :  { %s739_s22 = scalar_lea.vmem %s44_s21, 1024  ;;  %p744_p6 = scmp.lt.s32.totalorder %s44_s21, %s44_s21 }
  0x11   :  { %p740_p5 = scmp.ne.s32.totalorder %s44_s21, %s739_s22  ;;  %p745_p7 = scmp.lt.s32.totalorder %s739_s22, %s739_s22 }
  0x13   :  { %p746_p8 = por %p745_p7, %p744_p6 }
  0x15   :  { %p747_p9 = pnand %p746_p8, %p740_p5 }
  0x17   :  { %750 = shalt.err (!%p747_p9)
}
  0x18   :  { %49 = dma.hbm_to_vmem [thread:$0]  %s963_s5, 1024, %s44_s21, [#allocation6], %s778_s16, %s778_s16, %s779_s17  }
  0x19   :  { %771 = dma.done.wait [#allocation3], 256  }
  0x1a   :  { %772 = vsyncadd [#allocation3], 4294967040 }
  0x1b   :  { %773 = dma.done.wait [#allocation6], 1024  }
  0x1c   :  { %774 = vsyncadd [#allocation6], 4294966272  ;;  %v781_v0 = vmov 0.0   ;;  %vm782_vm0 = vmmov 0   ;;  %v673_v1 = vld [vmem:[#allocation2 + $0x8] sm:$0xff]   ;;  %v674_v2 = vld [vmem:[#allocation2] sm:$0xff]  }
  0x1d   :  { %596 = vmatprep.subr.bf16.mxu0 %v781_v0  ;;  %600 = vmatprep.mubr.msk.bf16.mxu0 %vm782_vm0, %v781_v0  ;;  %v65_v3 = vld [vmem:[%s958_s0] sm:$0xff]  ;;  %v66_v4 = vld [vmem:[%s958_s0 + $0x8] sm:$0xff]  ;;  %v675_v5 = vld [vmem:[%s961_s3 + $0x38] sm:$0xff]   ;;  %vm91_vm1 = vcmask 261120   ;;  %s783_s19 = smov [#allocation7]  }
  0x1e   :  { %604 = vmatprep.subr.bf16.mxu1 %v781_v0  ;;  %620 = vmatprep.mubr.msk.bf16.mxu1 %vm782_vm0, %v781_v0  ;;  %v67_v6 = vpack.c.bf16 %v66_v4, %v65_v3  ;;  %v677_v7 = vld [vmem:[%s961_s3 + $0x30] sm:$0xff]   ;;  %v676_v8 = vld [vmem:[#allocation5 + $0x38] sm:$0xff]   ;;  %v678_v10 = vld [vmem:[#allocation5 + $0x30] sm:$0xff]   ;;  %s521_s20 = sshll.u32 %s783_s19, 4  ;;  %s522_s20 = int_to_ptr.vmem [resolvable:$true] %s521_s20 }
  0x1f   :  { %597 = vmatpush3.bf16.msra.mxu0 %v673_v1  ;;  %605 = vmatpush3.bf16.msra.mxu1 %v675_v5  ;;  %v679_v9 = vld [vmem:[%s961_s3 + $0x28] sm:$0xff]   ;;  %v681_v11 = vld [vmem:[%s961_s3 + $0x20] sm:$0xff]   ;;  %v680_v12 = vld [vmem:[#allocation5 + $0x28] sm:$0xff]   ;;  %s751_s21 = scalar_lea.vmem %s522_s20, 256  ;;  %p756_p11 = scmp.lt.s32.totalorder %s522_s20, %s522_s20 }
  0x20   :  { %598 = vmatprep.subr.bf16.mxu0 %v781_v0  ;;  %606 = vmatprep.subr.bf16.mxu1 %v781_v0  ;;  %v683_v13 = vld [vmem:[%s961_s3 + $0x18] sm:$0xff]   ;;  %v682_v14 = vld [vmem:[#allocation5 + $0x20] sm:$0xff]   ;;  %v684_v16 = vld [vmem:[#allocation5 + $0x18] sm:$0xff]   ;;  %p752_p10 = scmp.ne.s32.totalorder %s522_s20, %s751_s21  ;;  %p757_p12 = scmp.lt.s32.totalorder %s751_s21, %s751_s21 }
  0x21   :  { %v685_v15 = vld [vmem:[%s961_s3 + $0x10] sm:$0xff]   ;;  %v686_v17 = vld [vmem:[#allocation5 + $0x10] sm:$0xff]   ;;  %v687_v18 = vld [vmem:[%s961_s3 + $0x8] sm:$0xff]  }
  0x22   :  { %v688_v19 = vld [vmem:[#allocation5 + $0x8] sm:$0xff]   ;;  %v689_v20 = vld [vmem:[%s961_s3] sm:$0xff]   ;;  %v690_v21 = vld [vmem:[#allocation5] sm:$0xff]   ;;  %p758_p13 = por %p757_p12, %p756_p11 }
  0x23   :  { %599 = vmatpush3.bf16.msra.mxu0 %v674_v2  ;;  %607 = vmatpush3.bf16.msra.mxu1 %v677_v7  ;;  %v534_v23 = vld [vmem:[%s960_s2] ss:$0 sm:$0xff]  ;;  %v691_v30 = vld [vmem:[%s965_s7 + $0x38] sm:$0xff]   ;;  %v692_v31 = vld [vmem:[%s965_s7 + $0x30] sm:$0xff]  }
  0x24   :  { %624 = vmatprep.subr.bf16.mxu0 %v781_v0  ;;  %608 = vmatprep.subr.bf16.mxu1 %v781_v0  ;;  %v693_v32 = vld [vmem:[%s965_s7 + $0x28] sm:$0xff]   ;;  %v694_v33 = vld [vmem:[%s965_s7 + $0x20] sm:$0xff]   ;;  %v695_v34 = vld [vmem:[%s965_s7 + $0x18] sm:$0xff]   ;;  %p759_p0 = pnand %p758_p13, %p752_p10 }
  0x25   :  { %v696_v35 = vld [vmem:[%s965_s7 + $0x10] sm:$0xff]   ;;  %v697_v36 = vld [vmem:[%s965_s7 + $0x8] sm:$0xff]   ;;  %v698_v37 = vld [vmem:[%s965_s7] sm:$0xff]  }
  0x26   :  { %601 = vmatmul.mubr.msk.bf16.vlgmr.msra.gmra.mxu0 %vm91_vm1, %v67_v6  ;;  %v538_v38 = vld [vmem:[%s962_s4] ss:$0 sm:$0xff] }
  0x27   :  { %625 = vmatpush3.bf16.msra.mxu0 %v676_v8  ;;  %640 = vmatprep.mubr.msk.bf16.mxu0 %vm782_vm0, %v781_v0  ;;  %v547_v58 = vld [vmem:[%s964_s6] ss:$0 sm:$0xff] }
  0x28   :  { %626 = vmatprep.subr.bf16.mxu0 %v781_v0  ;;  %609 = vmatpush3.bf16.msra.mxu1 %v679_v9  ;;  %v556_v3 = vld [vmem:[%s966_s8] ss:$0 sm:$0xff] }
  0x29   :  { %610 = vmatprep.subr.bf16.mxu1 %v781_v0 }
  0x2b   :  { %627 = vmatpush3.bf16.msra.mxu0 %v678_v10 }
  0x2c   :  { %628 = vmatprep.subr.bf16.mxu0 %v781_v0  ;;  %611 = vmatpush3.bf16.msra.mxu1 %v681_v11 }
  0x2d   :  { %612 = vmatprep.subr.bf16.mxu1 %v781_v0 }
  0x2f   :  { %629 = vmatpush3.bf16.msra.mxu0 %v680_v12 }
  0x30   :  { %630 = vmatprep.subr.bf16.mxu0 %v781_v0  ;;  %613 = vmatpush3.bf16.msra.mxu1 %v683_v13 }
  0x31   :  { %614 = vmatprep.subr.bf16.mxu1 %v781_v0 }
  0x33   :  { %631 = vmatpush3.bf16.msra.mxu0 %v682_v14 }
  0x34   :  { %632 = vmatprep.subr.bf16.mxu0 %v781_v0  ;;  %615 = vmatpush3.bf16.msra.mxu1 %v685_v15 }
  0x35   :  { %616 = vmatprep.subr.bf16.mxu1 %v781_v0 }
  0x37   :  { %633 = vmatpush3.bf16.msra.mxu0 %v684_v16 }
  0x38   :  { %634 = vmatprep.subr.bf16.mxu0 %v781_v0  ;;  %617 = vmatpush3.bf16.msra.mxu1 %v687_v18 }
  0x39   :  { %618 = vmatprep.subr.bf16.mxu1 %v781_v0 }
  0x3b   :  { %635 = vmatpush3.bf16.msra.mxu0 %v686_v17 }
  0x3c   :  { %636 = vmatprep.subr.bf16.mxu0 %v781_v0  ;;  %619 = vmatpush3.bf16.msra.mxu1 %v689_v20 }
  0x3d   :  { %644 = vmatprep.subr.bf16.mxu1 %v781_v0 }
  0x3f   :  { %637 = vmatpush3.bf16.msra.mxu0 %v688_v19 }
  0x40   :  { %638 = vmatprep.subr.bf16.mxu0 %v781_v0 }
  0x43   :  { %639 = vmatpush3.bf16.msra.mxu0 %v690_v21  ;;  %v565_v21 = vld [vmem:[%s967_s9] ss:$0 sm:$0xff] }
  0xe6   :  { %v129_v22 = vpop.f32.mrf.mxu0 }
  0xe7   :  { %v130_v26 = vadd.f32 %v534_v23, %v129_v22 }
  0xe8   :  { %v602_v24 = vpop.f32.mrf.mxu0 }
  0xea   :  { %v132_v25 = vpop.f32.mrf.mxu0 }
  0xeb   :  { %v133_v27 = vadd.f32 %v534_v23, %v132_v25 }
  0xec   :  { %v603_v28 = vpop.f32.mrf.mxu0 }
  0xed   :  { %v136_v29 = vpack.c.bf16 %v133_v27, %v130_v26 }
  0xef   :  { %621 = vmatmul.mubr.bf16.vlgmr.msra.gmra.mxu1 %v136_v29  ;;  %641 = vmatmul.mubr.bf16.vlgmr.msra.gmra.mxu0 %v136_v29 }
  0xf0   :  { %660 = vmatprep.mubr.msk.bf16.mxu1 %vm782_vm0, %v781_v0  ;;  %645 = vmatpush3.bf16.msra.mxu1 %v691_v30 }
  0xf1   :  { %646 = vmatprep.subr.bf16.mxu1 %v781_v0 }
  0xf4   :  { %647 = vmatpush3.bf16.msra.mxu1 %v692_v31 }
  0xf5   :  { %648 = vmatprep.subr.bf16.mxu1 %v781_v0 }
  0xf8   :  { %649 = vmatpush3.bf16.msra.mxu1 %v693_v32 }
  0xf9   :  { %650 = vmatprep.subr.bf16.mxu1 %v781_v0 }
  0xfc   :  { %651 = vmatpush3.bf16.msra.mxu1 %v694_v33 }
  0xfd   :  { %652 = vmatprep.subr.bf16.mxu1 %v781_v0 }
 0x100   :  { %653 = vmatpush3.bf16.msra.mxu1 %v695_v34 }
 0x101   :  { %654 = vmatprep.subr.bf16.mxu1 %v781_v0 }
 0x104   :  { %655 = vmatpush3.bf16.msra.mxu1 %v696_v35 }
 0x105   :  { %656 = vmatprep.subr.bf16.mxu1 %v781_v0 }
 0x108   :  { %657 = vmatpush3.bf16.msra.mxu1 %v697_v36 }
 0x109   :  { %658 = vmatprep.subr.bf16.mxu1 %v781_v0 }
 0x10c   :  { %659 = vmatpush3.bf16.msra.mxu1 %v698_v37 }
 0x1af   :  { %v242_v39 = vpop.f32.mrf.mxu1  ;;  %v354_v40 = vpop.f32.mrf.mxu0 }
 0x1b0   :  { %v243_v41 = vadd.f32 %v538_v38, %v242_v39  ;;  %v355_v61 = vadd.f32 %v547_v58, %v354_v40 }
 0x1b1   :  { %v622_v42 = vpop.f32.mrf.mxu1  ;;  %v642_v43 = vpop.f32.mrf.mxu0 }
 0x1b2   :  { %v361_v44 = vsub.f32 0.0, %v243_v41 }
 0x1b3   :  { %v245_v45 = vpop.f32.mrf.mxu1  ;;  %v357_v46 = vpop.f32.mrf.mxu0 }
 0x1b4   :  { %v363_v47 = vmul.f32 1.442695, %v361_v44  ;;  %v246_v48 = vadd.f32 %v538_v38, %v245_v45  ;;  %v358_v63 = vadd.f32 %v547_v58, %v357_v46 }
 0x1b5   :  { %v623_v49 = vpop.f32.mrf.mxu1  ;;  %v643_v50 = vpop.f32.mrf.mxu0 }
 0x1b6   :  { %699 = vpow2.f32 %v363_v47  ;;  %v362_v51 = vsub.f32 0.0, %v246_v48 }
 0x1b8   :  { %v365_v52 = vmul.f32 1.442695, %v362_v51 }
 0x1ba   :  { %701 = vpow2.f32 %v365_v52 }
 0x1c3   :  { %v700_v53 = vpop.eup %699 }
 0x1c4   :  { %v367_v54 = vadd.f32 1.0, %v700_v53 }
 0x1c6   :  { %703 = vrcp.f32 %v367_v54 }
 0x1c7   :  { %v702_v55 = vpop.eup %701 }
 0x1c8   :  { %v368_v56 = vadd.f32 1.0, %v702_v55 }
 0x1ca   :  { %705 = vrcp.f32 %v368_v56 }
 0x1d3   :  { %v704_v57 = vpop.eup %703 }
 0x1d4   :  { %v371_v59 = vmul.f32 %v704_v57, %v243_v41 }
 0x1d6   :  { %v373_v0 = vmul.f32 %v371_v59, %v355_v61 }
 0x1d7   :  { %v706_v60 = vpop.eup %705 }
 0x1d8   :  { %v372_v62 = vmul.f32 %v706_v60, %v246_v48 }
 0x1da   :  { %v374_v1 = vmul.f32 %v372_v62, %v358_v63 }
 0x1dc   :  { %v375_v2 = vpack.c.bf16 %v374_v1, %v373_v0 }
 0x1de   :  { %661 = vmatmul.mubr.bf16.vlgmr.msra.gmra.mxu1 %v375_v2 }
 0x29e   :  { %v481_v4 = vpop.f32.mrf.mxu1 }
 0x29f   :  { %v482_v5 = vadd.f32 %v556_v3, %v481_v4 }
 0x2a0   :  { %v662_v6 = vpop.f32.mrf.mxu1 }
 0x2a1   :  { %v489_v7 = vmul.f32 %v482_v5, %v482_v5 }
 0x2a2   :  { %v484_v8 = vpop.f32.mrf.mxu1 }
 0x2a3   :  { %v485_v9 = vadd.f32 %v556_v3, %v484_v8  ;;  %v491_v10 = vsel %vm91_vm1, %v489_v7, 0.0 }
 0x2a4   :  { %492 = vadd.xlane.f32.xlu0 %v491_v10  ;;  %v663_v11 = vpop.f32.mrf.mxu1 }
 0x2a5   :  { %v490_v12 = vmul.f32 %v485_v9, %v485_v9 }
 0x2a7   :  { %v494_v13 = vsel %vm91_vm1, %v490_v12, 0.0 }
 0x2a8   :  { %495 = vadd.xlane.f32.xlu0 %v494_v13 }
 0x32d   :  { %v493_v14 = vpop.xlane.xlu0 %492 }
 0x32e   :  { %v498_v15 = vmul.f32 0.03125, %v493_v14 }
 0x330   :  { %v500_v16 = vadd.f32 1e-05, %v498_v15 }
 0x331   :  { %v496_v17 = vpop.xlane.xlu0 %495 }
 0x332   :  { %707 = vrsqrt.f32 %v500_v16  ;;  %v499_v18 = vmul.f32 0.03125, %v496_v17 }
 0x334   :  { %v501_v19 = vadd.f32 1e-05, %v499_v18 }
 0x336   :  { %709 = vrsqrt.f32 %v501_v19 }
 0x33f   :  { %v708_v20 = vpop.eup %707 }
 0x340   :  { %v504_v22 = vmul.f32 %v708_v20, %v482_v5 }
 0x342   :  { %v512_v23 = vmul.f32 %v565_v21, %v504_v22 }
 0x343   :  { %v710_v24 = vpop.eup %709 }
 0x344   :  { %v505_v25 = vmul.f32 %v710_v24, %v485_v9  ;;  %514 = vst.msk [vmem:[#allocation7] sm:$0xff] %vm91_vm1, %v512_v23 }
 0x346   :  { %v513_v26 = vmul.f32 %v565_v21, %v505_v25 }
 0x348   :  { %515 = vst.msk [vmem:[#allocation7 + $0x8] sm:$0xff] %vm91_vm1, %v513_v26 }
 0x349   :  { %762 = shalt.err (!%p759_p0)
}
 0x34a   :  { %s784_s9 = smov 128   ;;  %s785_s22 = smov 8  }
 0x34b   :  { %527 = dma.vmem_to_hbm [thread:$0]  %s522_s20, 256, %s968_s10, [#allocation4], %s784_s9, %s784_s9, %s785_s22  }
 0x34c   :  { %775 = dma.done.wait [#allocation4], 256  }
 0x34d   :  { %776 = vsyncadd [#allocation4], 4294967040 }
 0x34e   :  { %531 = vsyncpa [#allocation3], 1 }
 0x34f   :  { %532 = vsyncpa [#allocation6], 1 }
 0x350   :  { %533 = vsyncpa [#allocation4], 1 }

</bundles_post_ra>
